<compile_context>
chip_gen: v6e
topology: v6e:2x2x1
jax: 0.10.0
libtpu: 0.0.40
codegen_flags: <defaults>
</compile_context>

<pallas_src>
import functools

import jax
import jax.numpy as jnp
from jax.experimental import pallas as pl
from jax.experimental.pallas import tpu as pltpu


# --------------------------------------------------------------------------
# Per-generation VMEM budgets.
# --------------------------------------------------------------------------
def _vmem_budgets():
    """Returns (block_budget_bytes, scoped_vmem_limit_bytes)."""
    cap = None
    try:
        cap = getattr(pltpu.get_tpu_info(), "vmem_capacity_bytes", None)
    except Exception:
        cap = None
    if cap is not None and cap >= (96 << 20):
        # v5e / v6e: 128 MiB physical VMEM per TensorCore -- use most of it so
        # blocks are multi-MB and DMAs stream at ~85%+ of HBM roofline.
        return 88 << 20, 104 << 20
    # v7x (64 MiB / TC) or unknown part: stay conservative and decouple the
    # block budget from the scoped limit (headroom for weights + compiler
    # internal scratch).
    return 24 << 20, 48 << 20


# --------------------------------------------------------------------------
# Fused single-pass kernel: whole (BB, C, HW) block per grid step.
# --------------------------------------------------------------------------
def _se_fused_kernel(x_ref, w1_ref, w2_ref, o_ref):
    hw = x_ref.shape[-1]

    # Squeeze: global average pool over the lane axis, f32 accumulation
    # without materializing a full f32 copy of the tile.
    y = jnp.sum(x_ref[...], axis=-1, dtype=jnp.float32) * (1.0 / hw)  # (BB, C)

    # Excitation: Linear(C -> C//r, no bias) + ReLU.
    h = jnp.maximum(
        jnp.dot(y, w1_ref[...], preferred_element_type=jnp.float32), 0.0)

    # Linear(C//r -> C, no bias) + Sigmoid.
    s = jax.nn.sigmoid(
        jnp.dot(h, w2_ref[...], preferred_element_type=jnp.float32))  # (BB, C)

    # Scale. Narrow dtypes multiply natively (no hidden f32 whole-tile temp).
    scale = s[:, :, None]
    if o_ref.dtype != jnp.float32:
        scale = scale.astype(o_ref.dtype)
    o_ref[...] = (x_ref[...] * scale).astype(o_ref.dtype)


def _se_fused(x, w1, w2, block_budget, vmem_limit):
    b, c, hw = x.shape
    itemsize = jnp.dtype(x.dtype).itemsize
    per_batch = c * hw * itemsize

    # 2 double-buffered input blocks + 2 output blocks + ~1 block of slack.
    budget_bb = max(1, block_budget // (5 * per_batch))
    # Keep >= 4 grid steps when the batch allows it: >= 2 pipelined steps per
    # TensorCore after v7x megacore sharding of the "parallel" axis.
    megacore_cap = max(1, b // 4)
    bb = max(1, min(budget_bb, megacore_cap, b))

    # Partial trailing block is fine: OOB reads only feed discarded padded
    # batch rows; OOB writes are dropped by Pallas.
    grid = (pl.cdiv(b, bb),)

    cr = w1.shape[1]
    cost = pl.CostEstimate(
        flops=4 * b * c * cr + 2 * b * c * hw,
        transcendentals=b * c,
        bytes_accessed=2 * b * c * hw * itemsize
        + (w1.size + w2.size) * jnp.dtype(w1.dtype).itemsize,
    )

    return pl.pallas_call(
        _se_fused_kernel,
        out_shape=jax.ShapeDtypeStruct((b, c, hw), x.dtype),
        grid=grid,
        in_specs=[
            pl.BlockSpec((bb, c, hw), lambda i: (i, 0, 0)),
            pl.BlockSpec(w1.shape, lambda i: (0, 0)),
            pl.BlockSpec(w2.shape, lambda i: (0, 0)),
        ],
        out_specs=pl.BlockSpec((bb, c, hw), lambda i: (i, 0, 0)),
        compiler_params=pltpu.CompilerParams(
            dimension_semantics=("parallel",),
            vmem_limit_bytes=vmem_limit,
        ),
        cost_estimate=cost,
    )(x, w1, w2)


# --------------------------------------------------------------------------
# Two-pass fallback: tiled masked mean-reduce + tiny FCs, then tiled scale.
# --------------------------------------------------------------------------
def _make_pool_fc_kernel(hw_total, thw):
    rem = hw_total % thw           # valid elements in the last (partial) tile
    inv_hw = 1.0 / float(hw_total)

    def kernel(x_ref, w1_ref, w2_ref, s_ref, acc_ref):
        j = pl.program_id(1)
        last = pl.num_programs(1) - 1

        @pl.when(j == 0)
        def _():
            acc_ref[...] = jnp.zeros_like(acc_ref)

        if rem == 0:
            acc_ref[...] += jnp.sum(x_ref[...], axis=-1, dtype=jnp.float32)
        else:
            @pl.when(j < last)
            def _():
                acc_ref[...] += jnp.sum(x_ref[...], axis=-1, dtype=jnp.float32)

            @pl.when(j == last)
            def _():
                # Mask the padded tail of the last HW tile (native dtype, no
                # f32 whole-tile temp).
                lane = jax.lax.broadcasted_iota(
                    jnp.int32, x_ref.shape, x_ref.ndim - 1)
                xb = jnp.where(lane < rem, x_ref[...],
                               jnp.zeros((), x_ref.dtype))
                acc_ref[...] += jnp.sum(xb, axis=-1, dtype=jnp.float32)

        @pl.when(j == last)
        def _():
            y = acc_ref[...] * inv_hw                                 # (BB, C)
            h = jnp.maximum(
                jnp.dot(y, w1_ref[...], preferred_element_type=jnp.float32),
                0.0)
            s = jax.nn.sigmoid(
                jnp.dot(h, w2_ref[...], preferred_element_type=jnp.float32))
            s_ref[...] = s[:, :, None].astype(s_ref.dtype)            # (BB,C,1)

    return kernel


def _se_apply_kernel(x_ref, s_ref, o_ref):
    scale = s_ref[...]                      # (BB, C, 1), broadcasts over lanes
    if o_ref.dtype != jnp.float32:
        scale = scale.astype(o_ref.dtype)
    o_ref[...] = (x_ref[...] * scale).astype(o_ref.dtype)


def _se_two_pass(x, w1, w2, block_budget, vmem_limit, block_hw=None):
    b, c, hw = x.shape
    itemsize = jnp.dtype(x.dtype).itemsize

    if block_hw is None:
        per_col = c * itemsize              # bytes for one HW column across C
        max_thw = max(1, block_budget // (5 * per_col))
        thw = max(128, (max_thw // 128) * 128)   # lane-dense HW tiles
        thw = min(thw, hw)
    else:
        thw = min(int(block_hw), hw)

    bb = 1
    nb = pl.cdiv(b, bb)
    nhw = pl.cdiv(hw, thw)
    cr = w1.shape[1]
    w_bytes = (w1.size + w2.size) * jnp.dtype(w1.dtype).itemsize

    # Pass 1: tiled global-average-pool + tiny FCs -> s = (B, C, 1) float32.
    pool_cost = pl.CostEstimate(
        flops=b * c * hw + 4 * b * c * cr,
        transcendentals=b * c,
        bytes_accessed=b * c * hw * itemsize + w_bytes + b * c * 4,
    )
    s = pl.pallas_call(
        _make_pool_fc_kernel(hw, thw),
        out_shape=jax.ShapeDtypeStruct((b, c, 1), jnp.float32),
        grid=(nb, nhw),
        in_specs=[
            pl.BlockSpec((bb, c, thw), lambda i, j: (i, 0, j)),
            pl.BlockSpec(w1.shape, lambda i, j: (0, 0)),
            pl.BlockSpec(w2.shape, lambda i, j: (0, 0)),
        ],
        out_specs=pl.BlockSpec((bb, c, 1), lambda i, j: (i, 0, 0)),
        scratch_shapes=[pltpu.VMEM((bb, c), jnp.float32)],
        compiler_params=pltpu.CompilerParams(
            dimension_semantics=("parallel", "arbitrary"),
            vmem_limit_bytes=vmem_limit,
        ),
        cost_estimate=pool_cost,
    )(x, w1, w2)

    # Pass 2: apply the per-(b, c) sigmoid scale, tiled over HW.
    apply_cost = pl.CostEstimate(
        flops=b * c * hw,
        transcendentals=0,
        bytes_accessed=2 * b * c * hw * itemsize + b * c * 4,
    )
    return pl.pallas_call(
        _se_apply_kernel,
        out_shape=jax.ShapeDtypeStruct((b, c, hw), x.dtype),
        grid=(nb, nhw),
        in_specs=[
            pl.BlockSpec((bb, c, thw), lambda i, j: (i, 0, j)),
            pl.BlockSpec((bb, c, 1), lambda i, j: (i, 0, 0)),
        ],
        out_specs=pl.BlockSpec((bb, c, thw), lambda i, j: (i, 0, j)),
        compiler_params=pltpu.CompilerParams(
            dimension_semantics=("parallel", "parallel"),
            vmem_limit_bytes=vmem_limit,
        ),
        cost_estimate=apply_cost,
    )(x, s)


# --------------------------------------------------------------------------
# Public wrapper.
# --------------------------------------------------------------------------
@functools.partial(jax.jit, static_argnames=("force_two_pass", "block_hw"))
def se_layer(x_nchw, w1, w2, force_two_pass=False, block_hw=None):
    """x_nchw: (B, C, H, W); w1: (C, C//r); w2: (C//r, C)."""
    b, c, h, w = x_nchw.shape
    hw = h * w
    x = x_nchw.reshape(b, c, hw)

    itemsize = jnp.dtype(x.dtype).itemsize
    block_budget, vmem_limit = _vmem_budgets()
    fits_fused = (5 * c * hw * itemsize) <= block_budget

    if fits_fused and not force_two_pass and block_hw is None:
        out = _se_fused(x, w1, w2, block_budget, vmem_limit)
    else:
        out = _se_two_pass(x, w1, w2, block_budget, vmem_limit, block_hw)
    return out.reshape(b, c, h, w)


def se_layer_reference(x_nchw, w1, w2):
    """Pure-JAX reference matching the PyTorch forward."""
    y = jnp.mean(x_nchw.astype(jnp.float32), axis=(2, 3))            # (B, C)
    h = jnp.maximum(y @ w1, 0.0)                                     # (B, C//r)
    s = jax.nn.sigmoid(h @ w2)                                       # (B, C)
    return (x_nchw * s[:, :, None, None]).astype(x_nchw.dtype)


if __name__ == "__main__":
    # Shapes consistent with SELayer(channel=32, reduction=16): hidden = 2.
    B, C, H, W = 4, 32, 16, 16
    REDUCTION = 16
    CR = C // REDUCTION

    key = jax.random.PRNGKey(0)
    kx, k1, k2, kx2 = jax.random.split(key, 4)

    x = jax.random.normal(kx, (B, C, H, W), dtype=jnp.float32)
    # nn.Linear(channel, channel//r).weight has shape (C//r, C); we store the
    # transpose so the kernel computes y @ w1 directly. Same for the second FC.
    w1 = jax.random.normal(k1, (C, CR), dtype=jnp.float32) * 0.1
    w2 = jax.random.normal(k2, (CR, C), dtype=jnp.float32) * 0.1

    # Fused single-pass path.
    out = se_layer(x, w1, w2)
    jax.block_until_ready(out)
    ref = se_layer_reference(x, w1, w2)
    assert out.shape == (B, C, H, W)
    assert jnp.allclose(out, ref, atol=1e-5, rtol=1e-5), "fused mismatch"

    # Two-pass (HW-tiled) fallback path, including a partial last HW tile
    # (10*20 = 200 = 128 + 72) that exercises the masked reduction.
    x2 = jax.random.normal(kx2, (2, C, 10, 20), dtype=jnp.float32)
    out2 = se_layer(x2, w1, w2, force_two_pass=True, block_hw=128)
    jax.block_until_ready(out2)
    ref2 = se_layer_reference(x2, w1, w2)
    assert out2.shape == x2.shape
    assert jnp.allclose(out2, ref2, atol=1e-5, rtol=1e-5), "two-pass mismatch"

    print("KERNEL_OK")
</pallas_src>

<mosaic_0001>
module attributes {stable_mosaic.version = 11 : i64} {
  func.func @_se_fused_kernel(%arg0: i32, %arg1: memref<1x32x256xf32, #tpu.memory_space<vmem>>, %arg2: memref<32x2xf32, #tpu.memory_space<vmem>>, %arg3: memref<2x32xf32, #tpu.memory_space<vmem>>, %arg4: memref<1x32x256xf32, #tpu.memory_space<vmem>>) attributes {dimension_semantics = [#tpu.dimension_semantics<parallel>], iteration_bounds = array<i64: 4>, scalar_prefetch = 0 : i64, scratch_operands = 0 : i64, tpu.core_type = #tpu.core_type<tc>, window_params = [{transform_indices = @transform_0, window_bounds = array<i64: 1, 32, 256>}, {pipeline_mode = #tpu.pipeline_mode<synchronous>, transform_indices = @transform_1, window_bounds = array<i64: 32, 2>}, {pipeline_mode = #tpu.pipeline_mode<synchronous>, transform_indices = @transform_2, window_bounds = array<i64: 2, 32>}, {transform_indices = @transform_3, window_bounds = array<i64: 1, 32, 256>}]} {
    %c0 = arith.constant 0 : index
    %c0_0 = arith.constant 0 : index
    %c0_1 = arith.constant 0 : index
    %0 = vector.load %arg1[%c0, %c0_0, %c0_1] : memref<1x32x256xf32, #tpu.memory_space<vmem>>, vector<1x32x256xf32>
    %cst = arith.constant dense<0.000000e+00> : vector<1x32xf32>
    %1 = vector.multi_reduction <add>, %0, %cst [2] : vector<1x32x256xf32> to vector<1x32xf32>
    %cst_2 = arith.constant 3.906250e-03 : f32
    %2 = vector.broadcast %cst_2 : f32 to vector<1x32xf32>
    %3 = arith.mulf %1, %2 : vector<1x32xf32>
    %c0_3 = arith.constant 0 : index
    %c0_4 = arith.constant 0 : index
    %4 = vector.load %arg2[%c0_3, %c0_4] : memref<32x2xf32, #tpu.memory_space<vmem>>, vector<32x2xf32>
    %cst_5 = arith.constant dense<0.000000e+00> : vector<1x2xf32>
    %5 = tpu.matmul %3, %4, %cst_5 {dimension_numbers = #tpu.dot_dimension_numbers<[1], [0], [0], [1], [0, 0, 1, 1], [], []>} : vector<1x32xf32>, vector<32x2xf32>, vector<1x2xf32> -> vector<1x2xf32>
    %cst_6 = arith.constant 0.000000e+00 : f32
    %6 = vector.broadcast %cst_6 : f32 to vector<1x2xf32>
    %7 = arith.maximumf %5, %6 : vector<1x2xf32>
    %c0_7 = arith.constant 0 : index
    %c0_8 = arith.constant 0 : index
    %8 = vector.load %arg3[%c0_7, %c0_8] : memref<2x32xf32, #tpu.memory_space<vmem>>, vector<2x32xf32>
    %cst_9 = arith.constant dense<0.000000e+00> : vector<1x32xf32>
    %9 = tpu.matmul %7, %8, %cst_9 {dimension_numbers = #tpu.dot_dimension_numbers<[1], [0], [0], [1], [0, 0, 1, 1], [], []>} : vector<1x2xf32>, vector<2x32xf32>, vector<1x32xf32> -> vector<1x32xf32>
    %10 = arith.negf %9 : vector<1x32xf32>
    %11 = math.exp %10 : vector<1x32xf32>
    %cst_10 = arith.constant 1.000000e+00 : f32
    %12 = vector.broadcast %cst_10 : f32 to vector<1x32xf32>
    %13 = arith.addf %12, %11 : vector<1x32xf32>
    %14 = arith.divf %12, %13 : vector<1x32xf32>
    %15 = vector.shape_cast %14 : vector<1x32xf32> to vector<1x32x1xf32>
    %c0_11 = arith.constant 0 : index
    %c0_12 = arith.constant 0 : index
    %c0_13 = arith.constant 0 : index
    %16 = vector.load %arg1[%c0_11, %c0_12, %c0_13] : memref<1x32x256xf32, #tpu.memory_space<vmem>>, vector<1x32x256xf32>
    %17 = vector.broadcast %15 : vector<1x32x1xf32> to vector<1x32x256xf32>
    %18 = arith.mulf %16, %17 : vector<1x32x256xf32>
    %c0_14 = arith.constant 0 : index
    %c0_15 = arith.constant 0 : index
    %c0_16 = arith.constant 0 : index
    %19 = vector.load %arg4[%c0_14, %c0_15, %c0_16] : memref<1x32x256xf32, #tpu.memory_space<vmem>>, vector<1x32x256xf32>
    tpu.vector_store %arg4[%c0_14, %c0_15, %c0_16], %18 {strides = array<i32>} : memref<1x32x256xf32, #tpu.memory_space<vmem>>, vector<1x32x256xf32>,
    return
  }
  func.func @transform_0(%arg0: i32) -> (i32, i32, i32) {
    %c0_i32 = arith.constant 0 : i32
    %c0_i32_0 = arith.constant 0 : i32
    %c0_i32_1 = arith.constant 0 : i32
    return %arg0, %c0_i32, %c0_i32_0 : i32, i32, i32
  }
  func.func @transform_1(%arg0: i32) -> (i32, i32) {
    %c0_i32 = arith.constant 0 : i32
    %c0_i32_0 = arith.constant 0 : i32
    %c0_i32_1 = arith.constant 0 : i32
    return %c0_i32, %c0_i32_0 : i32, i32
  }
  func.func @transform_2(%arg0: i32) -> (i32, i32) {
    %c0_i32 = arith.constant 0 : i32
    %c0_i32_0 = arith.constant 0 : i32
    %c0_i32_1 = arith.constant 0 : i32
    return %c0_i32, %c0_i32_0 : i32, i32
  }
  func.func @transform_3(%arg0: i32) -> (i32, i32, i32) {
    %c0_i32 = arith.constant 0 : i32
    %c0_i32_0 = arith.constant 0 : i32
    %c0_i32_1 = arith.constant 0 : i32
    return %arg0, %c0_i32, %c0_i32_0 : i32, i32, i32
  }
}

</mosaic_0001>

<bundles_post_ra>
// kernel: se_layer.1
= control target key start
LH: loop header
LB: loop body
LE: loop exit
PB: predicated region body
PF: predicated region fallthrough
CT: control target
= control target key end

     0   :  { %s563_s12 = smov 0   ;;  %s634_s0 = inlined_call_operand.vmem [shape: f32[4,32,256], index: 0, kind: input, shape index: {}]   ;;  %s635_s1 = inlined_call_operand.vmem [shape: f32[32,2], index: 1, kind: input, shape index: {}]   ;;  %s636_s2 = inlined_call_operand.vmem [shape: f32[2,32], index: 2, kind: input, shape index: {}]   ;;  %s637_s3 = inlined_call_operand.vmem [shape: f32[4,32,256], index: 3, kind: output, shape index: {}]  }
   0x1 LB: > { %s479_s13 = sadd.s32 4294967295, %s539_s12   ;;  %p483_p0 = scmp.ge.s32.totalorder %s539_s12, 1  ;;  %s539_s12 = sphi %s563_s12, %s13_s12  }
   0x2   : > { %p137_p1 = scmp.lt.s32.totalorder %s539_s12, 5 }
   0x4   : > { %p138_p2 = pnand %p483_p0, %p137_p1 }
   0x5   : > { %p161_p3 = scmp.lt.s32.totalorder (!%p138_p2), %s479_s13, 3 }
   0x6   : > { %141 = sbr.rel (%p138_p2) target bundleno = 714 (0x2ca), region = 32 }
   0xb   : > { %s639_s13 = smov (!%p161_p3, %s479_s13), 3  ;;  %v541_v12 = vmov 0.0   ;;  %v198_v13 = vld [vmem:[%s635_s1 + $0x18] sm:$0xff]  ;;  %v197_v14 = vld [vmem:[%s635_s1 + $0x10] sm:$0xff]  ;;  %v196_v15 = vld [vmem:[%s635_s1 + $0x8] sm:$0xff]  ;;  %vm542_vm0 = vmmov 0   ;;  %v203_v17 = vlaneseq }
   0xc   : > { %s494_s14 = sshll.u32 %s639_s13, 6  ;;  %503 = vmatprep.subr.mxu0 %v541_v12  ;;  %514 = vmatprep.subr.mxu1 %v541_v12  ;;  %v195_v16 = vld [vmem:[%s635_s1] sm:$0xff]  ;;  %vm214_vm1 = vcmask 130112   ;;  %vm221_vm2 = vcmask 195712   ;;  %vm228_vm3 = vcmask 261312   ;;  %vm230_vm4 = vcmask 261120  }
   0xd   : > { %s165_s17 = scalar_lea.vmem %s634_s0, %s494_s14  ;;  %504 = vmatpush3.msra.mxu0 %v198_v13  ;;  %511 = vmatprep.mubr.msk.f32.mxu0 %vm542_vm0, %v541_v12  ;;  %v204_v18 = vand.u32 127, %v203_v17  ;;  %v206_v19 = vshrl.u32 %v203_v17, 7  ;;  %v304_v42 = vld [vmem:[%s636_s2] sm:$0x3]  ;;  %vm309_vm5 = vcmask 1041408   ;;  %vm305_vm6 = vcmask 15360   ;;  %s170_s30 = scalar_lea.vmem %s637_s3, %s494_s14 }
   0xe   : > { %v579_v0 = vld [vmem:[%s165_s17] sm:$0xff]  ;;  %v581_v1 = vld [vmem:[%s165_s17 + $0x8] sm:$0xff]  ;;  %v589_v5 = vld [vmem:[%s165_s17 + $0x10] sm:$0xff]  ;;  %505 = vmatprep.subr.mxu0 %v541_v12  ;;  %516 = vmatprep.mubr.msk.f32.mxu1 %vm542_vm0, %v541_v12 }
   0xf   : > { %v583_v2 = vld [vmem:[%s165_s17 + $0x20] sm:$0xff]  ;;  %v179_v3 = vadd.f32 %v581_v1, %v579_v0  ;;  %v587_v4 = vld [vmem:[%s165_s17 + $0x28] sm:$0xff]  ;;  %v591_v6 = vld [vmem:[%s165_s17 + $0x18] sm:$0xff]  ;;  %506 = vmatpush3.msra.mxu0 %v197_v14  ;;  %v209_v20 = vadd.s32 4294967288, %v204_v18  ;;  %v216_v22 = vadd.s32 4294967280, %v204_v18  ;;  %v223_v23 = vadd.s32 4294967272, %v204_v18  ;;  %515 = vmatpush3.msk.msra.mxu1 %vm309_vm5, %v304_v42 }
  0x10   : > { %v185_v7 = vadd.f32 %v587_v4, %v583_v2  ;;  %v595_v8 = vld [vmem:[%s165_s17 + $0x30] sm:$0xff]  ;;  %v597_v9 = vld [vmem:[%s165_s17 + $0x38] sm:$0xff]  ;;  %v182_v10 = vadd.f32 %v591_v6, %v589_v5  ;;  %507 = vmatprep.subr.mxu0 %v541_v12  ;;  %v207_v25 = vsub.s32 %v204_v18, %v206_v19  ;;  %v391_v51 = vsub.s32 0, %v206_v19 }
  0x11   : > { %180 = vadd.xlane.f32.xlu0 %v179_v3  ;;  %v188_v11 = vadd.f32 %v597_v9, %v595_v8  ;;  %508 = vmatpush3.msra.mxu0 %v196_v15  ;;  %v212_v27 = vsub.s32 %v209_v20, %v206_v19  ;;  %v219_v28 = vsub.s32 %v216_v22, %v206_v19 }
  0x12   : > { %186 = vadd.xlane.f32.xlu1 %v185_v7  ;;  %509 = vmatprep.subr.mxu0 %v541_v12  ;;  %v226_v31 = vsub.s32 %v223_v23, %v206_v19 }
  0x13   : > { %510 = vmatpush3.msra.mxu0 %v195_v16 }
  0x15   : > { %183 = vadd.xlane.f32.xlu0 %v182_v10 }
  0x16   : > { %189 = vadd.xlane.f32.xlu1 %v188_v11 }
  0x9a   : > { %v181_v21 = vpop.xlane.xlu0 %180 }
  0x9b   : > { %v187_v24 = vpop.xlane.xlu1 %186  ;;  %v191_v26 = vmul.f32 0.00390625, %v181_v21 }
  0x9c   : > { %v193_v29 = vmul.f32 0.00390625, %v187_v24 }
  0x9d   : > { %v208_v35 = vrot.slane %v191_v26, %v207_v25 }
  0x9e   : > { %v184_v30 = vpop.xlane.xlu0 %183  ;;  %v220_v37 = vrot.slane %v193_v29, %v219_v28 }
  0x9f   : > { %v192_v32 = vmul.f32 0.00390625, %v184_v30  ;;  %v190_v33 = vpop.xlane.xlu1 %189 }
  0xa0   : > { %v194_v34 = vmul.f32 0.00390625, %v190_v33 }
  0xa1   : > { %v213_v36 = vrot.slane %v192_v32, %v212_v27 }
  0xa2   : > { %v227_v38 = vrot.slane %v194_v34, %v226_v31 }
  0xa3   : > { %v215_v39 = vsel %vm214_vm1, %v213_v36, %v208_v35 }
  0xa4   : > { %v222_v40 = vsel %vm221_vm2, %v220_v37, %v215_v39 }
  0xa5   : > { %v229_v41 = vsel %vm228_vm3, %v227_v38, %v222_v40 }
  0xa6   : > { %512 = vmatmul.mubr.msk.f32.vlgmr.msra.gmra.mxu0 %vm230_vm4, %v229_v41 }
 0x166   : > { %v299_v43 = vpop.f32.mrf.mxu0 }
 0x167   : > { %v303_v44 = vmax.f32 %v299_v43, 0.0 }
 0x168   : > { %v513_v45 = vpop.f32.mrf.mxu0 }
 0x169   : > { %517 = vmatmul.mubr.msk.f32.vlgmr.msra.gmra.mxu1 %vm305_vm6, %v303_v44 }
 0x229   : > { %v379_v46 = vpop.f32.mrf.mxu1 }
 0x22a   : > { %v491_v47 = vmul.f32 -1.442695, %v379_v46 }
 0x22b   : > { %v518_v48 = vpop.f32.mrf.mxu1 }
 0x22c   : > { %529 = vpow2.f32 %v491_v47 }
 0x239   : > { %v530_v49 = vpop.eup %529 }
 0x23a   : > { %v386_v50 = vadd.f32 1.0, %v530_v49 }
 0x23c   : > { %531 = vrcp.f32 %v386_v50 }
 0x249   : > { %v532_v52 = vpop.eup %531 }
 0x24a   : > { %v392_v53 = vrot.slane %v532_v52, %v391_v51 }
 0x24c   : > { %398 = vbcast.lane.b32.xlu1 %v392_v53, 264  ;;  %394 = vbcast.lane.b32.xlu0 %v392_v53, 256 }
 0x250   : > { %402 = vbcast.lane.b32.xlu1 %v392_v53, 272 }
 0x254   : > { %406 = vbcast.lane.b32.xlu1 %v392_v53, 280 }
 0x2be   : > { %v399_v54 = vpop.permute.xlu1 %398  ;;  %v395_v55 = vpop.permute.xlu0 %394 }
 0x2bf   : > { %v410_v56 = vmul.f32 %v399_v54, %v589_v5  ;;  %v411_v57 = vmul.f32 %v399_v54, %v591_v6  ;;  %v408_v58 = vmul.f32 %v395_v55, %v579_v0  ;;  %v409_v59 = vmul.f32 %v395_v55, %v581_v1 }
 0x2c1   : > { %418 = vst [vmem:[%s170_s30 + $0x10] sm:$0xff] %v410_v56  ;;  %419 = vst [vmem:[%s170_s30 + $0x18] sm:$0xff] %v411_v57 }
 0x2c2   : > { %416 = vst [vmem:[%s170_s30] sm:$0xff] %v408_v58  ;;  %417 = vst [vmem:[%s170_s30 + $0x8] sm:$0xff] %v409_v59  ;;  %v403_v60 = vpop.permute.xlu1 %402 }
 0x2c3   : > { %v412_v61 = vmul.f32 %v403_v60, %v583_v2  ;;  %v413_v62 = vmul.f32 %v403_v60, %v587_v4 }
 0x2c5   : > { %420 = vst [vmem:[%s170_s30 + $0x20] sm:$0xff] %v412_v61  ;;  %421 = vst [vmem:[%s170_s30 + $0x28] sm:$0xff] %v413_v62 }
 0x2c6   : > { %v407_v63 = vpop.permute.xlu1 %406 }
 0x2c7   : > { %v414_v3 = vmul.f32 %v407_v63, %v595_v8  ;;  %v415_v5 = vmul.f32 %v407_v63, %v597_v9 }
 0x2c9   : > { %422 = vst [vmem:[%s170_s30 + $0x30] sm:$0xff] %v414_v3  ;;  %423 = vst [vmem:[%s170_s30 + $0x38] sm:$0xff] %v415_v5 }
 0x2ca PF: > { %s13_s12 = sadd.s32 1, %s539_s12  }
 0x2cb   : > { %p10_p4 = scmp.ge.s32.totalorder %s13_s12, 6  }
 0x2cd   :  { %12 = sbr.rel (!%p10_p4) target bundleno = 1 (0x1), region = 62 }

</bundles_post_ra>
